<compile_context>
chip_gen: v7x
topology: tpu7x:2x2x1
jax: 0.10.0
libtpu: 0.0.40
codegen_flags: <defaults>
</compile_context>

<pallas_src>
import functools

import jax
import jax.numpy as jnp
from jax import lax
from jax.experimental import pallas as pl
from jax.experimental.pallas import tpu as pltpu


def _dac_kernel(x_ref, w1_ref, w3_ref, wct_ref, wcb_ref,
                b1_ref, b3_ref, bc_ref, o_ref, *,
                H, W, stack_taps, use_bf16):
    """One lane strip: channels on sublanes, (images * H * W) on lanes."""
    C, N = x_ref.shape                      # N = imgs_per_strip * H * W
    HW = H * W

    x = x_ref[...]                          # (C, N) f32
    w1 = w1_ref[...]
    b1 = b1_ref[...]                        # (C, 1)

    def mm(w, a):
        # MXU matmul; optionally bf16 operands (weights already cast in the
        # wrapper), always accumulate in f32.
        if use_bf16:
            a = a.astype(jnp.bfloat16)
        return jnp.dot(w, a, preferred_element_type=jnp.float32)

    # ---- dilate1(x): 1x1 conv == channel matmul (pre-ReLU feeds the 3x3) ----
    y1 = mm(w1, x) + b1
    d1 = jnp.maximum(y1, 0.0)

    # ---- dilate3(y1): 3x3 conv, padding=1, via lane rolls + border masks ----
    # Masks depend only on the lane index -> (1, N) iota, broadcast over C.
    # Strips contain whole images, so the within-image offset is p % HW; the
    # same masks also kill cross-image / strip-wrap taps produced by roll.
    p = lax.broadcasted_iota(jnp.int32, (1, N), 1)
    q = p % HW                              # offset inside its image
    j = q % W                               # column
    row_ok = {-1: q >= W, 1: q < (H - 1) * W}
    col_ok = {-1: j >= 1, 1: j < (W - 1)}

    def make_tap(dy, dx):
        if dy == 0 and dx == 0:
            return y1                       # center tap: no roll, no mask
        shift = (-(dy * W + dx)) % N        # tap[p] = y1[p + dy*W + dx]
        tap = pltpu.roll(y1, shift=shift, axis=1)
        mask = None
        if dy != 0:
            mask = row_ok[dy]
        if dx != 0:
            mask = col_ok[dx] if mask is None else jnp.logical_and(mask, col_ok[dx])
        return jnp.where(mask, tap, 0.0)

    if stack_taps:
        # Small/medium C: stack the 9 taps on sublanes -> one (C,9C)@(9C,N)
        # matmul (K raised from C to 9C, one MXU push instead of 9).
        stacked = jnp.concatenate(
            [make_tap(k // 3 - 1, k % 3 - 1) for k in range(9)], axis=0)
        acc = mm(w3_ref[...], stacked) + b3_ref[...]
    else:
        # Large C: chained dots into one accumulator (MRB in-place accumulate
        # on v7x); taps created and consumed one at a time to bound liveness.
        acc = mm(w3_ref[4], y1) + b3_ref[...]            # center tap + bias
        for k in range(9):
            if k == 4:
                continue
            acc = acc + mm(w3_ref[k], make_tap(k // 3 - 1, k % 3 - 1))
    d2 = jnp.maximum(acc, 0.0)

    # ---- conv1x1 on concat([d1, d2]) with the concat split into two dots ----
    dc = jnp.maximum(mm(wct_ref[...], d1) + mm(wcb_ref[...], d2) + bc_ref[...], 0.0)

    # ---- dilate1(dc) + residual ---------------------------------------------
    d3 = jnp.maximum(mm(w1, dc) + b1, 0.0)
    o_ref[...] = (x + d3).astype(o_ref.dtype)


def _const_spec(block_shape, single_buffer):
    """BlockSpec for a grid-invariant operand (weights / biases)."""
    ndim = len(block_shape)
    index_map = lambda s: (0,) * ndim
    if single_buffer:
        # Constant-index blocks don't benefit from double buffering; request a
        # single buffer so large weights (9*C^2 at production C) aren't
        # duplicated in VMEM.  Fall back gracefully if unsupported.
        try:
            return pl.BlockSpec(block_shape, index_map,
                                pipeline_mode=pl.Buffered(1))
        except TypeError:
            pass
    return pl.BlockSpec(block_shape, index_map)


def _pick_vmem_limit(working_set_bytes):
    """Scoped-VMEM limit derived from this chip's capacity (v5e/v6e: 128 MiB,
    v7x: 64 MiB) and the actual working set, not a hard-coded constant."""
    try:
        cap = int(pltpu.get_tpu_info().vmem_capacity_bytes)
    except Exception:
        cap = 64 * 1024 * 1024
    want = max(2 * int(working_set_bytes), 32 * 1024 * 1024)
    return int(min(want, (cap * 3) // 4, 100 * 1024 * 1024))


def dac_block_with_inception(x_nchw, params):
    """x_nchw: (B, C, H, W) float32 -> (B, C, H, W) float32."""
    w1, b1, w3, b3, wc, bc = params          # PyTorch (out, in[, kh, kw]) layouts
    B, C, H, W = x_nchw.shape
    HW, N = H * W, B * H * W

    # Static codegen choices (C known at trace time):
    #  * stacked-tap matmul only when the sublane concat is tile-aligned
    #    (C % 8 == 0) and K = 9C stays modest; else per-tap chained dots.
    #  * bf16 MXU operands once the kernel is MXU-bound (large C); elementwise
    #    math stays f32 (v5e VPU/EUP have no bf16).
    stack_taps = (C % 8 == 0) and (C <= 128)
    use_bf16 = C >= 128
    mm_dtype = jnp.bfloat16 if use_bf16 else jnp.float32

    # Fold batch into the lane axis: (B,C,H,W) -> (C, B*H*W).  One kernel step
    # then sees one big lane-dense matmul N instead of B tiny grid steps.
    x = jnp.transpose(x_nchw, (1, 0, 2, 3)).reshape(C, N)

    # Strip selection: each grid step handles a whole number of images (no 3x3
    # halo needed: the per-image border masks already kill roll wrap-around).
    # TODO(synk): for production CE-Net shapes on v7x (C=512, 64x64) add a
    # sub-image row-strip grid axis with a 1-row halo to bound the working set
    # under the 64 MiB VMEM ceiling.
    bytes_per_lane = 4 * C * (20 if stack_taps else 14)   # rough live f32 temps
    act_budget = 24 * 1024 * 1024
    imgs_per_strip = max(1, min(B, act_budget // max(bytes_per_lane * HW, 1)))
    while B % imgs_per_strip:                             # strips = whole images
        imgs_per_strip -= 1
    strip = imgs_per_strip * HW
    num_strips = B // imgs_per_strip
    if num_strips > 1 and strip % 128 != 0:               # keep lanes 128-aligned
        imgs_per_strip, strip, num_strips = B, N, 1

    # Weight prep (PyTorch layouts -> matmul layouts); concat-conv split in two.
    if stack_taps:
        # (O,I,3,3) -> (O, 9*I): column block k*C:(k+1)*C is w3[:, :, ky, kx].
        w3p = jnp.transpose(w3, (0, 2, 3, 1)).reshape(C, 9 * C)
    else:
        # (O,I,3,3) -> (9, O, I), indexed by k = ky*3 + kx.
        w3p = jnp.transpose(w3, (2, 3, 0, 1)).reshape(9, C, C)
    w1p = w1.astype(mm_dtype)
    w3p = w3p.astype(mm_dtype)
    wct = wc[:, :C].astype(mm_dtype)
    wcb = wc[:, C:].astype(mm_dtype)
    b1c, b3c, bcc = (b.reshape(C, 1) for b in (b1, b3, bc))

    weight_bytes = (w1p.size + w3p.size + wct.size + wcb.size) * w1p.dtype.itemsize
    working_set = (2 * weight_bytes                 # worst case: double-buffered
                   + 2 * 2 * C * strip * 4          # double-buffered x & out strips
                   + bytes_per_lane * strip)        # live activations

    single_buffer_weights = num_strips > 1
    kernel = functools.partial(_dac_kernel, H=H, W=W,
                               stack_taps=stack_taps, use_bf16=use_bf16)
    out = pl.pallas_call(
        kernel,
        out_shape=jax.ShapeDtypeStruct((C, N), x.dtype),
        grid=(num_strips,),
        in_specs=[
            pl.BlockSpec((C, strip), lambda s: (0, s)),        # x strip
            _const_spec(w1p.shape, single_buffer_weights),     # w1 (dilate1)
            _const_spec(w3p.shape, single_buffer_weights),     # w3 (stacked or taps)
            _const_spec(wct.shape, single_buffer_weights),     # conv1x1 wt [:, :C]
            _const_spec(wcb.shape, single_buffer_weights),     # conv1x1 wt [:, C:]
            _const_spec(b1c.shape, single_buffer_weights),     # b1
            _const_spec(b3c.shape, single_buffer_weights),     # b3
            _const_spec(bcc.shape, single_buffer_weights),     # bc
        ],
        out_specs=pl.BlockSpec((C, strip), lambda s: (0, s)),
        compiler_params=pltpu.CompilerParams(
            dimension_semantics=("parallel",),   # strips shard across v7x's 2 TCs
            vmem_limit_bytes=_pick_vmem_limit(working_set),
        ),
    )(x, w1p, w3p, wct, wcb, b1c, b3c, bcc)

    # Undo the batch fold: (C, B*H*W) -> (B, C, H, W).
    return jnp.transpose(out.reshape(C, B, H, W), (1, 0, 2, 3))


# ----------------------------- pure-JAX reference ---------------------------
def dac_block_reference(x_nchw, params):
    w1, b1, w3, b3, wc, bc = params
    C = w1.shape[0]

    def conv(inp, w_oihw, b, padding):
        y = lax.conv_general_dilated(
            inp, w_oihw, window_strides=(1, 1), padding=padding,
            dimension_numbers=("NCHW", "OIHW", "NCHW"),
            precision=lax.Precision.HIGHEST)
        return y + b.reshape(1, -1, 1, 1)

    w1_oihw = w1.reshape(C, C, 1, 1)
    wc_oihw = wc.reshape(C, 2 * C, 1, 1)
    y1 = conv(x_nchw, w1_oihw, b1, "VALID")                       # dilate1(x), pre-ReLU
    d1 = jax.nn.relu(y1)
    d2 = jax.nn.relu(conv(y1, w3, b3, [(1, 1), (1, 1)]))
    dc = jax.nn.relu(conv(jnp.concatenate([d1, d2], axis=1), wc_oihw, bc, "VALID"))
    d3 = jax.nn.relu(conv(dc, w1_oihw, b1, "VALID"))
    return x_nchw + d3


def make_params(key, channel):
    k1, k3, kc = jax.random.split(key, 3)
    # PyTorch Conv2d weight layout: (out, in[, kh, kw])
    w1 = 0.1 * jax.random.normal(k1, (channel, channel), jnp.float32)
    w3 = 0.1 * jax.random.normal(k3, (channel, channel, 3, 3), jnp.float32)
    wc = 0.1 * jax.random.normal(kc, (channel, 2 * channel), jnp.float32)
    # biases zeroed exactly as in the PyTorch module's __init__
    b1 = jnp.zeros((channel,), jnp.float32)
    b3 = jnp.zeros((channel,), jnp.float32)
    bc = jnp.zeros((channel,), jnp.float32)
    return (w1, b1, w3, b3, wc, bc)


if __name__ == "__main__":
    key = jax.random.PRNGKey(0)
    kx, kp = jax.random.split(key)

    B, C, H, W = 2, 4, 16, 16
    x = jax.random.normal(kx, (B, C, H, W), jnp.float32)
    params = make_params(kp, C)

    out = jax.block_until_ready(dac_block_with_inception(x, params))
    ref = jax.block_until_ready(dac_block_reference(x, params))

    assert out.shape == (B, C, H, W)
    assert jnp.allclose(out, ref, atol=1e-4, rtol=1e-4), "mismatch vs reference"

    print("KERNEL_OK")
</pallas_src>

<mosaic_0001>
module attributes {stable_mosaic.version = 11 : i64} {
  func.func @_dac_kernel(%arg0: i32, %arg1: memref<4x512xf32, #tpu.memory_space<vmem>>, %arg2: memref<4x4xf32, #tpu.memory_space<vmem>>, %arg3: memref<9x4x4xf32, #tpu.memory_space<vmem>>, %arg4: memref<4x4xf32, #tpu.memory_space<vmem>>, %arg5: memref<4x4xf32, #tpu.memory_space<vmem>>, %arg6: memref<4x1xf32, #tpu.memory_space<vmem>>, %arg7: memref<4x1xf32, #tpu.memory_space<vmem>>, %arg8: memref<4x1xf32, #tpu.memory_space<vmem>>, %arg9: memref<4x512xf32, #tpu.memory_space<vmem>>) attributes {dimension_semantics = [#tpu.dimension_semantics<parallel>], iteration_bounds = array<i64: 1>, scalar_prefetch = 0 : i64, scratch_operands = 0 : i64, tpu.core_type = #tpu.core_type<tc>, window_params = [{transform_indices = @transform_0, window_bounds = array<i64: 4, 512>}, {pipeline_mode = #tpu.pipeline_mode<synchronous>, transform_indices = @transform_1, window_bounds = array<i64: 4, 4>}, {pipeline_mode = #tpu.pipeline_mode<synchronous>, transform_indices = @transform_2, window_bounds = array<i64: 9, 4, 4>}, {pipeline_mode = #tpu.pipeline_mode<synchronous>, transform_indices = @transform_3, window_bounds = array<i64: 4, 4>}, {pipeline_mode = #tpu.pipeline_mode<synchronous>, transform_indices = @transform_4, window_bounds = array<i64: 4, 4>}, {pipeline_mode = #tpu.pipeline_mode<synchronous>, transform_indices = @transform_5, window_bounds = array<i64: 4, 1>}, {pipeline_mode = #tpu.pipeline_mode<synchronous>, transform_indices = @transform_6, window_bounds = array<i64: 4, 1>}, {pipeline_mode = #tpu.pipeline_mode<synchronous>, transform_indices = @transform_7, window_bounds = array<i64: 4, 1>}, {transform_indices = @transform_8, window_bounds = array<i64: 4, 512>}]} {
    %c0 = arith.constant 0 : index
    %c0_0 = arith.constant 0 : index
    %0 = vector.load %arg1[%c0, %c0_0] : memref<4x512xf32, #tpu.memory_space<vmem>>, vector<4x512xf32>
    %c0_1 = arith.constant 0 : index
    %c0_2 = arith.constant 0 : index
    %1 = vector.load %arg2[%c0_1, %c0_2] : memref<4x4xf32, #tpu.memory_space<vmem>>, vector<4x4xf32>
    %c0_3 = arith.constant 0 : index
    %c0_4 = arith.constant 0 : index
    %2 = vector.load %arg6[%c0_3, %c0_4] : memref<4x1xf32, #tpu.memory_space<vmem>>, vector<4x1xf32>
    %cst = arith.constant dense<0.000000e+00> : vector<4x512xf32>
    %3 = tpu.matmul %1, %0, %cst {dimension_numbers = #tpu.dot_dimension_numbers<[1], [0], [0], [1], [0, 0, 1, 1], [], []>} : vector<4x4xf32>, vector<4x512xf32>, vector<4x512xf32> -> vector<4x512xf32>
    %4 = vector.broadcast %2 : vector<4x1xf32> to vector<4x512xf32>
    %5 = arith.addf %3, %4 : vector<4x512xf32>
    %cst_5 = arith.constant 0.000000e+00 : f32
    %6 = vector.broadcast %cst_5 : f32 to vector<4x512xf32>
    %7 = arith.maximumf %5, %6 : vector<4x512xf32>
    %8 = tpu.iota {dimensions = array<i32: 1>} : vector<1x512xi32>
    %c256_i32 = arith.constant 256 : i32
    %c0_i32 = arith.constant 0 : i32
    %9 = arith.cmpi eq, %c256_i32, %c0_i32 : i32
    %c1_i32 = arith.constant 1 : i32
    %10 = arith.select %9, %c1_i32, %c256_i32 : i32
    %11 = vector.broadcast %10 : i32 to vector<1x512xi32>
    %12 = arith.remsi %8, %11 : vector<1x512xi32>
    %c0_i32_6 = arith.constant 0 : i32
    %13 = vector.broadcast %c0_i32_6 : i32 to vector<1x512xi32>
    %14 = arith.cmpi ne, %12, %13 : vector<1x512xi32>
    %c0_i32_7 = arith.constant 0 : i32
    %15 = vector.broadcast %c0_i32_7 : i32 to vector<1x512xi32>
    %16 = arith.cmpi slt, %12, %15 : vector<1x512xi32>
    %c0_i32_8 = arith.constant 0 : i32
    %17 = arith.cmpi slt, %10, %c0_i32_8 : i32
    %18 = vector.broadcast %17 : i1 to vector<1x512xi1>
    %19 = vector.broadcast %18 : vector<1x512xi1> to vector<1x512xi1>
    %20 = arith.xori %16, %19 : vector<1x512xi1>
    %21 = arith.andi %20, %14 : vector<1x512xi1>
    %22 = vector.broadcast %10 : i32 to vector<1x512xi32>
    %23 = arith.addi %12, %22 : vector<1x512xi32>
    %24 = arith.select %21, %23, %12 : vector<1x512xi1>, vector<1x512xi32>
    %c16_i32 = arith.constant 16 : i32
    %c0_i32_9 = arith.constant 0 : i32
    %25 = arith.cmpi eq, %c16_i32, %c0_i32_9 : i32
    %c1_i32_10 = arith.constant 1 : i32
    %26 = arith.select %25, %c1_i32_10, %c16_i32 : i32
    %27 = vector.broadcast %26 : i32 to vector<1x512xi32>
    %28 = arith.remsi %24, %27 : vector<1x512xi32>
    %c0_i32_11 = arith.constant 0 : i32
    %29 = vector.broadcast %c0_i32_11 : i32 to vector<1x512xi32>
    %30 = arith.cmpi ne, %28, %29 : vector<1x512xi32>
    %c0_i32_12 = arith.constant 0 : i32
    %31 = vector.broadcast %c0_i32_12 : i32 to vector<1x512xi32>
    %32 = arith.cmpi slt, %28, %31 : vector<1x512xi32>
    %c0_i32_13 = arith.constant 0 : i32
    %33 = arith.cmpi slt, %26, %c0_i32_13 : i32
    %34 = vector.broadcast %33 : i1 to vector<1x512xi1>
    %35 = vector.broadcast %34 : vector<1x512xi1> to vector<1x512xi1>
    %36 = arith.xori %32, %35 : vector<1x512xi1>
    %37 = arith.andi %36, %30 : vector<1x512xi1>
    %38 = vector.broadcast %26 : i32 to vector<1x512xi32>
    %39 = arith.addi %28, %38 : vector<1x512xi32>
    %40 = arith.select %37, %39, %28 : vector<1x512xi1>, vector<1x512xi32>
    %c16_i32_14 = arith.constant 16 : i32
    %41 = vector.broadcast %c16_i32_14 : i32 to vector<1x512xi32>
    %42 = arith.cmpi sge, %24, %41 : vector<1x512xi32>
    %c240_i32 = arith.constant 240 : i32
    %43 = vector.broadcast %c240_i32 : i32 to vector<1x512xi32>
    %44 = arith.cmpi slt, %24, %43 : vector<1x512xi32>
    %c1_i32_15 = arith.constant 1 : i32
    %45 = vector.broadcast %c1_i32_15 : i32 to vector<1x512xi32>
    %46 = arith.cmpi sge, %40, %45 : vector<1x512xi32>
    %c15_i32 = arith.constant 15 : i32
    %47 = vector.broadcast %c15_i32 : i32 to vector<1x512xi32>
    %48 = arith.cmpi slt, %40, %47 : vector<1x512xi32>
    %c4 = arith.constant 4 : index
    %c0_16 = arith.constant 0 : index
    %c0_17 = arith.constant 0 : index
    %49 = vector.load %arg3[%c4, %c0_16, %c0_17] : memref<9x4x4xf32, #tpu.memory_space<vmem>>, vector<1x4x4xf32>
    %50 = vector.shape_cast %49 : vector<1x4x4xf32> to vector<4x4xf32>
    %cst_18 = arith.constant dense<0.000000e+00> : vector<4x512xf32>
    %51 = tpu.matmul %50, %5, %cst_18 {dimension_numbers = #tpu.dot_dimension_numbers<[1], [0], [0], [1], [0, 0, 1, 1], [], []>} : vector<4x4xf32>, vector<4x512xf32>, vector<4x512xf32> -> vector<4x512xf32>
    %c0_19 = arith.constant 0 : index
    %c0_20 = arith.constant 0 : index
    %52 = vector.load %arg7[%c0_19, %c0_20] : memref<4x1xf32, #tpu.memory_space<vmem>>, vector<4x1xf32>
    %53 = vector.broadcast %52 : vector<4x1xf32> to vector<4x512xf32>
    %54 = arith.addf %51, %53 : vector<4x512xf32>
    %c0_21 = arith.constant 0 : index
    %c0_22 = arith.constant 0 : index
    %c0_23 = arith.constant 0 : index
    %55 = vector.load %arg3[%c0_21, %c0_22, %c0_23] : memref<9x4x4xf32, #tpu.memory_space<vmem>>, vector<1x4x4xf32>
    %56 = vector.shape_cast %55 : vector<1x4x4xf32> to vector<4x4xf32>
    %c17_i32 = arith.constant 17 : i32
    %57 = tpu.dynamic_rotate %5 by %c17_i32 dim 1 : vector<4x512xf32>, i32 -> vector<4x512xf32>
    %58 = arith.andi %42, %46 : vector<1x512xi1>
    %cst_24 = arith.constant 0.000000e+00 : f32
    %59 = vector.shape_cast %58 : vector<1x512xi1> to vector<1x512xi1>
    %60 = vector.broadcast %59 : vector<1x512xi1> to vector<4x512xi1>
    %61 = vector.broadcast %cst_24 : f32 to vector<4x512xf32>
    %62 = arith.select %60, %57, %61 : vector<4x512xi1>, vector<4x512xf32>
    %cst_25 = arith.constant dense<0.000000e+00> : vector<4x512xf32>
    %63 = tpu.matmul %56, %62, %cst_25 {dimension_numbers = #tpu.dot_dimension_numbers<[1], [0], [0], [1], [0, 0, 1, 1], [], []>} : vector<4x4xf32>, vector<4x512xf32>, vector<4x512xf32> -> vector<4x512xf32>
    %64 = arith.addf %54, %63 : vector<4x512xf32>
    %c1 = arith.constant 1 : index
    %c0_26 = arith.constant 0 : index
    %c0_27 = arith.constant 0 : index
    %65 = vector.load %arg3[%c1, %c0_26, %c0_27] : memref<9x4x4xf32, #tpu.memory_space<vmem>>, vector<1x4x4xf32>
    %66 = vector.shape_cast %65 : vector<1x4x4xf32> to vector<4x4xf32>
    %c16_i32_28 = arith.constant 16 : i32
    %67 = tpu.dynamic_rotate %5 by %c16_i32_28 dim 1 : vector<4x512xf32>, i32 -> vector<4x512xf32>
    %cst_29 = arith.constant 0.000000e+00 : f32
    %68 = vector.shape_cast %42 : vector<1x512xi1> to vector<1x512xi1>
    %69 = vector.broadcast %68 : vector<1x512xi1> to vector<4x512xi1>
    %70 = vector.broadcast %cst_29 : f32 to vector<4x512xf32>
    %71 = arith.select %69, %67, %70 : vector<4x512xi1>, vector<4x512xf32>
    %cst_30 = arith.constant dense<0.000000e+00> : vector<4x512xf32>
    %72 = tpu.matmul %66, %71, %cst_30 {dimension_numbers = #tpu.dot_dimension_numbers<[1], [0], [0], [1], [0, 0, 1, 1], [], []>} : vector<4x4xf32>, vector<4x512xf32>, vector<4x512xf32> -> vector<4x512xf32>
    %73 = arith.addf %64, %72 : vector<4x512xf32>
    %c2 = arith.constant 2 : index
    %c0_31 = arith.constant 0 : index
    %c0_32 = arith.constant 0 : index
    %74 = vector.load %arg3[%c2, %c0_31, %c0_32] : memref<9x4x4xf32, #tpu.memory_space<vmem>>, vector<1x4x4xf32>
    %75 = vector.shape_cast %74 : vector<1x4x4xf32> to vector<4x4xf32>
    %c15_i32_33 = arith.constant 15 : i32
    %76 = tpu.dynamic_rotate %5 by %c15_i32_33 dim 1 : vector<4x512xf32>, i32 -> vector<4x512xf32>
    %77 = arith.andi %42, %48 : vector<1x512xi1>
    %cst_34 = arith.constant 0.000000e+00 : f32
    %78 = vector.shape_cast %77 : vector<1x512xi1> to vector<1x512xi1>
    %79 = vector.broadcast %78 : vector<1x512xi1> to vector<4x512xi1>
    %80 = vector.broadcast %cst_34 : f32 to vector<4x512xf32>
    %81 = arith.select %79, %76, %80 : vector<4x512xi1>, vector<4x512xf32>
    %cst_35 = arith.constant dense<0.000000e+00> : vector<4x512xf32>
    %82 = tpu.matmul %75, %81, %cst_35 {dimension_numbers = #tpu.dot_dimension_numbers<[1], [0], [0], [1], [0, 0, 1, 1], [], []>} : vector<4x4xf32>, vector<4x512xf32>, vector<4x512xf32> -> vector<4x512xf32>
    %83 = arith.addf %73, %82 : vector<4x512xf32>
    %c3 = arith.constant 3 : index
    %c0_36 = arith.constant 0 : index
    %c0_37 = arith.constant 0 : index
    %84 = vector.load %arg3[%c3, %c0_36, %c0_37] : memref<9x4x4xf32, #tpu.memory_space<vmem>>, vector<1x4x4xf32>
    %85 = vector.shape_cast %84 : vector<1x4x4xf32> to vector<4x4xf32>
    %c1_i32_38 = arith.constant 1 : i32
    %86 = tpu.dynamic_rotate %5 by %c1_i32_38 dim 1 : vector<4x512xf32>, i32 -> vector<4x512xf32>
    %cst_39 = arith.constant 0.000000e+00 : f32
    %87 = vector.shape_cast %46 : vector<1x512xi1> to vector<1x512xi1>
    %88 = vector.broadcast %87 : vector<1x512xi1> to vector<4x512xi1>
    %89 = vector.broadcast %cst_39 : f32 to vector<4x512xf32>
    %90 = arith.select %88, %86, %89 : vector<4x512xi1>, vector<4x512xf32>
    %cst_40 = arith.constant dense<0.000000e+00> : vector<4x512xf32>
    %91 = tpu.matmul %85, %90, %cst_40 {dimension_numbers = #tpu.dot_dimension_numbers<[1], [0], [0], [1], [0, 0, 1, 1], [], []>} : vector<4x4xf32>, vector<4x512xf32>, vector<4x512xf32> -> vector<4x512xf32>
    %92 = arith.addf %83, %91 : vector<4x512xf32>
    %c5 = arith.constant 5 : index
    %c0_41 = arith.constant 0 : index
    %c0_42 = arith.constant 0 : index
    %93 = vector.load %arg3[%c5, %c0_41, %c0_42] : memref<9x4x4xf32, #tpu.memory_space<vmem>>, vector<1x4x4xf32>
    %94 = vector.shape_cast %93 : vector<1x4x4xf32> to vector<4x4xf32>
    %c511_i32 = arith.constant 511 : i32
    %95 = tpu.dynamic_rotate %5 by %c511_i32 dim 1 : vector<4x512xf32>, i32 -> vector<4x512xf32>
    %cst_43 = arith.constant 0.000000e+00 : f32
    %96 = vector.shape_cast %48 : vector<1x512xi1> to vector<1x512xi1>
    %97 = vector.broadcast %96 : vector<1x512xi1> to vector<4x512xi1>
    %98 = vector.broadcast %cst_43 : f32 to vector<4x512xf32>
    %99 = arith.select %97, %95, %98 : vector<4x512xi1>, vector<4x512xf32>
    %cst_44 = arith.constant dense<0.000000e+00> : vector<4x512xf32>
    %100 = tpu.matmul %94, %99, %cst_44 {dimension_numbers = #tpu.dot_dimension_numbers<[1], [0], [0], [1], [0, 0, 1, 1], [], []>} : vector<4x4xf32>, vector<4x512xf32>, vector<4x512xf32> -> vector<4x512xf32>
    %101 = arith.addf %92, %100 : vector<4x512xf32>
    %c6 = arith.constant 6 : index
    %c0_45 = arith.constant 0 : index
    %c0_46 = arith.constant 0 : index
    %102 = vector.load %arg3[%c6, %c0_45, %c0_46] : memref<9x4x4xf32, #tpu.memory_space<vmem>>, vector<1x4x4xf32>
    %103 = vector.shape_cast %102 : vector<1x4x4xf32> to vector<4x4xf32>
    %c497_i32 = arith.constant 497 : i32
    %104 = tpu.dynamic_rotate %5 by %c497_i32 dim 1 : vector<4x512xf32>, i32 -> vector<4x512xf32>
    %105 = arith.andi %44, %46 : vector<1x512xi1>
    %cst_47 = arith.constant 0.000000e+00 : f32
    %106 = vector.shape_cast %105 : vector<1x512xi1> to vector<1x512xi1>
    %107 = vector.broadcast %106 : vector<1x512xi1> to vector<4x512xi1>
    %108 = vector.broadcast %cst_47 : f32 to vector<4x512xf32>
    %109 = arith.select %107, %104, %108 : vector<4x512xi1>, vector<4x512xf32>
    %cst_48 = arith.constant dense<0.000000e+00> : vector<4x512xf32>
    %110 = tpu.matmul %103, %109, %cst_48 {dimension_numbers = #tpu.dot_dimension_numbers<[1], [0], [0], [1], [0, 0, 1, 1], [], []>} : vector<4x4xf32>, vector<4x512xf32>, vector<4x512xf32> -> vector<4x512xf32>
    %111 = arith.addf %101, %110 : vector<4x512xf32>
    %c7 = arith.constant 7 : index
    %c0_49 = arith.constant 0 : index
    %c0_50 = arith.constant 0 : index
    %112 = vector.load %arg3[%c7, %c0_49, %c0_50] : memref<9x4x4xf32, #tpu.memory_space<vmem>>, vector<1x4x4xf32>
    %113 = vector.shape_cast %112 : vector<1x4x4xf32> to vector<4x4xf32>
    %c496_i32 = arith.constant 496 : i32
    %114 = tpu.dynamic_rotate %5 by %c496_i32 dim 1 : vector<4x512xf32>, i32 -> vector<4x512xf32>
    %cst_51 = arith.constant 0.000000e+00 : f32
    %115 = vector.shape_cast %44 : vector<1x512xi1> to vector<1x512xi1>
    %116 = vector.broadcast %115 : vector<1x512xi1> to vector<4x512xi1>
    %117 = vector.broadcast %cst_51 : f32 to vector<4x512xf32>
    %118 = arith.select %116, %114, %117 : vector<4x512xi1>, vector<4x512xf32>
    %cst_52 = arith.constant dense<0.000000e+00> : vector<4x512xf32>
    %119 = tpu.matmul %113, %118, %cst_52 {dimension_numbers = #tpu.dot_dimension_numbers<[1], [0], [0], [1], [0, 0, 1, 1], [], []>} : vector<4x4xf32>, vector<4x512xf32>, vector<4x512xf32> -> vector<4x512xf32>
    %120 = arith.addf %111, %119 : vector<4x512xf32>
    %c8 = arith.constant 8 : index
    %c0_53 = arith.constant 0 : index
    %c0_54 = arith.constant 0 : index
    %121 = vector.load %arg3[%c8, %c0_53, %c0_54] : memref<9x4x4xf32, #tpu.memory_space<vmem>>, vector<1x4x4xf32>
    %122 = vector.shape_cast %121 : vector<1x4x4xf32> to vector<4x4xf32>
    %c495_i32 = arith.constant 495 : i32
    %123 = tpu.dynamic_rotate %5 by %c495_i32 dim 1 : vector<4x512xf32>, i32 -> vector<4x512xf32>
    %124 = arith.andi %44, %48 : vector<1x512xi1>
    %cst_55 = arith.constant 0.000000e+00 : f32
    %125 = vector.shape_cast %124 : vector<1x512xi1> to vector<1x512xi1>
    %126 = vector.broadcast %125 : vector<1x512xi1> to vector<4x512xi1>
    %127 = vector.broadcast %cst_55 : f32 to vector<4x512xf32>
    %128 = arith.select %126, %123, %127 : vector<4x512xi1>, vector<4x512xf32>
    %cst_56 = arith.constant dense<0.000000e+00> : vector<4x512xf32>
    %129 = tpu.matmul %122, %128, %cst_56 {dimension_numbers = #tpu.dot_dimension_numbers<[1], [0], [0], [1], [0, 0, 1, 1], [], []>} : vector<4x4xf32>, vector<4x512xf32>, vector<4x512xf32> -> vector<4x512xf32>
    %130 = arith.addf %120, %129 : vector<4x512xf32>
    %cst_57 = arith.constant 0.000000e+00 : f32
    %131 = vector.broadcast %cst_57 : f32 to vector<4x512xf32>
    %132 = arith.maximumf %130, %131 : vector<4x512xf32>
    %c0_58 = arith.constant 0 : index
    %c0_59 = arith.constant 0 : index
    %133 = vector.load %arg4[%c0_58, %c0_59] : memref<4x4xf32, #tpu.memory_space<vmem>>, vector<4x4xf32>
    %cst_60 = arith.constant dense<0.000000e+00> : vector<4x512xf32>
    %134 = tpu.matmul %133, %7, %cst_60 {dimension_numbers = #tpu.dot_dimension_numbers<[1], [0], [0], [1], [0, 0, 1, 1], [], []>} : vector<4x4xf32>, vector<4x512xf32>, vector<4x512xf32> -> vector<4x512xf32>
    %c0_61 = arith.constant 0 : index
    %c0_62 = arith.constant 0 : index
    %135 = vector.load %arg5[%c0_61, %c0_62] : memref<4x4xf32, #tpu.memory_space<vmem>>, vector<4x4xf32>
    %cst_63 = arith.constant dense<0.000000e+00> : vector<4x512xf32>
    %136 = tpu.matmul %135, %132, %cst_63 {dimension_numbers = #tpu.dot_dimension_numbers<[1], [0], [0], [1], [0, 0, 1, 1], [], []>} : vector<4x4xf32>, vector<4x512xf32>, vector<4x512xf32> -> vector<4x512xf32>
    %137 = arith.addf %134, %136 : vector<4x512xf32>
    %c0_64 = arith.constant 0 : index
    %c0_65 = arith.constant 0 : index
    %138 = vector.load %arg8[%c0_64, %c0_65] : memref<4x1xf32, #tpu.memory_space<vmem>>, vector<4x1xf32>
    %139 = vector.broadcast %138 : vector<4x1xf32> to vector<4x512xf32>
    %140 = arith.addf %137, %139 : vector<4x512xf32>
    %cst_66 = arith.constant 0.000000e+00 : f32
    %141 = vector.broadcast %cst_66 : f32 to vector<4x512xf32>
    %142 = arith.maximumf %140, %141 : vector<4x512xf32>
    %cst_67 = arith.constant dense<0.000000e+00> : vector<4x512xf32>
    %143 = tpu.matmul %1, %142, %cst_67 {dimension_numbers = #tpu.dot_dimension_numbers<[1], [0], [0], [1], [0, 0, 1, 1], [], []>} : vector<4x4xf32>, vector<4x512xf32>, vector<4x512xf32> -> vector<4x512xf32>
    %144 = vector.broadcast %2 : vector<4x1xf32> to vector<4x512xf32>
    %145 = arith.addf %143, %144 : vector<4x512xf32>
    %cst_68 = arith.constant 0.000000e+00 : f32
    %146 = vector.broadcast %cst_68 : f32 to vector<4x512xf32>
    %147 = arith.maximumf %145, %146 : vector<4x512xf32>
    %148 = arith.addf %0, %147 : vector<4x512xf32>
    %c0_69 = arith.constant 0 : index
    %c0_70 = arith.constant 0 : index
    %149 = vector.load %arg9[%c0_69, %c0_70] : memref<4x512xf32, #tpu.memory_space<vmem>>, vector<4x512xf32>
    tpu.vector_store %arg9[%c0_69, %c0_70], %148 {strides = array<i32>} : memref<4x512xf32, #tpu.memory_space<vmem>>, vector<4x512xf32>,
    return
  }
  func.func @transform_0(%arg0: i32) -> (i32, i32) {
    %c0_i32 = arith.constant 0 : i32
    %c0_i32_0 = arith.constant 0 : i32
    return %c0_i32, %arg0 : i32, i32
  }
  func.func @transform_1(%arg0: i32) -> (i32, i32) {
    %c0_i32 = arith.constant 0 : i32
    %c0_i32_0 = arith.constant 0 : i32
    %c0_i32_1 = arith.constant 0 : i32
    return %c0_i32, %c0_i32_0 : i32, i32
  }
  func.func @transform_2(%arg0: i32) -> (i32, i32, i32) {
    %c0_i32 = arith.constant 0 : i32
    %c0_i32_0 = arith.constant 0 : i32
    %c0_i32_1 = arith.constant 0 : i32
    %c0_i32_2 = arith.constant 0 : i32
    return %c0_i32, %c0_i32_0, %c0_i32_1 : i32, i32, i32
  }
  func.func @transform_3(%arg0: i32) -> (i32, i32) {
    %c0_i32 = arith.constant 0 : i32
    %c0_i32_0 = arith.constant 0 : i32
    %c0_i32_1 = arith.constant 0 : i32
    return %c0_i32, %c0_i32_0 : i32, i32
  }
  func.func @transform_4(%arg0: i32) -> (i32, i32) {
    %c0_i32 = arith.constant 0 : i32
    %c0_i32_0 = arith.constant 0 : i32
    %c0_i32_1 = arith.constant 0 : i32
    return %c0_i32, %c0_i32_0 : i32, i32
  }
  func.func @transform_5(%arg0: i32) -> (i32, i32) {
    %c0_i32 = arith.constant 0 : i32
    %c0_i32_0 = arith.constant 0 : i32
    %c0_i32_1 = arith.constant 0 : i32
    return %c0_i32, %c0_i32_0 : i32, i32
  }
  func.func @transform_6(%arg0: i32) -> (i32, i32) {
    %c0_i32 = arith.constant 0 : i32
    %c0_i32_0 = arith.constant 0 : i32
    %c0_i32_1 = arith.constant 0 : i32
    return %c0_i32, %c0_i32_0 : i32, i32
  }
  func.func @transform_7(%arg0: i32) -> (i32, i32) {
    %c0_i32 = arith.constant 0 : i32
    %c0_i32_0 = arith.constant 0 : i32
    %c0_i32_1 = arith.constant 0 : i32
    return %c0_i32, %c0_i32_0 : i32, i32
  }
  func.func @transform_8(%arg0: i32) -> (i32, i32) {
    %c0_i32 = arith.constant 0 : i32
    %c0_i32_0 = arith.constant 0 : i32
    return %c0_i32, %arg0 : i32, i32
  }
}

</mosaic_0001>

<bundles_post_ra>
// kernel: tpu_custom_call.1
= control target key start
LH: loop header
LB: loop body
LE: loop exit
PB: predicated region body
PF: predicated region fallthrough
CT: control target
= control target key end

     0   :  { %vm47_vm0 = vcmask 1043456   ;;  %v2686_v4 = vmov 0.0   ;;  %s3171_s0 = inlined_call_operand.vmem [shape: f32[4,512], index: 0, kind: input, shape index: {}]   ;;  %s3172_s1 = inlined_call_operand.vmem [shape: f32[4,4], index: 1, kind: input, shape index: {}]   ;;  %s3173_s2 = inlined_call_operand.vmem [shape: f32[9,4,4], index: 2, kind: input, shape index: {}]   ;;  %s3174_s3 = inlined_call_operand.vmem [shape: f32[4,4], index: 3, kind: input, shape index: {}]   ;;  %s3175_s4 = inlined_call_operand.vmem [shape: f32[4,4], index: 4, kind: input, shape index: {}]   ;;  %s3176_s5 = inlined_call_operand.vmem [shape: f32[4,1], index: 5, kind: input, shape index: {}]   ;;  %s3177_s6 = inlined_call_operand.vmem [shape: f32[4,1], index: 6, kind: input, shape index: {}]   ;;  %s3178_s7 = inlined_call_operand.vmem [shape: f32[4,1], index: 7, kind: input, shape index: {}]   ;;  %s3179_s8 = inlined_call_operand.hbm [shape: f32[4,512], index: 8, kind: output, shape index: {}]  }
   0x1   :  { %v2745_v0 = vld [vmem:[%s3171_s0] sm:$0xff]  ;;  %v2750_v1 = vld [vmem:[%s3171_s0 + $0x8] sm:$0xff]  ;;  %120 = vmatprep.mubr.f32.mxu0 %v2686_v4  ;;  %191 = vmatprep.mubr.f32.mxu1 %v2686_v4 }
   0x2   :  { %v41_v2 = vcombine.high %v2745_v0, %v2745_v0  ;;  %v42_v3 = vcombine.high %v2750_v1, %v2750_v1 }
   0x3   :  { %13 = vsyncpa [#allocation3], 0  ;;  %v2761_v5 = vld [vmem:[%s3172_s1] sm:$0xf]  ;;  %vm43_vm1 = vcmask 31744   ;;  %v2687_v6 = vmov 0   ;;  %v202_v20 = vlaneseq }
   0x4   :  { %2658 = vset.pattern.permute.xlu0 %v2687_v6  ;;  %2659 = vset.pattern.permute.xlu1 %v2687_v6  ;;  %v33_v7 = vld [vmem:[%s3176_s5] sm:$0xf]  ;;  %s2688_s1 = smov 17   ;;  %v2527_v17 = vld [vmem:[%s3173_s2 + $0x10] sm:$0xf]  ;;  %s2689_s13 = smov 16  }
   0x5   :  { %2521 = vmatprep.subr.msk.mxu0 %vm47_vm0, %v41_v2  ;;  %2524 = vmatprep.subr.msk.mxu1 %vm47_vm0, %v42_v3  ;;  %s2690_s14 = smov 15   ;;  %s2691_s15 = smov 1   ;;  %v2323_v18 = vld [vmem:[%s3178_s7] sm:$0xf]  ;;  %v2845_v21 = vand.u32 127, %v202_v20 }
   0x6   :  { %2522 = vmatpush1.msk.msra.mxu0 %vm47_vm0, %v2745_v0  ;;  %2525 = vmatpush1.msk.msra.mxu1 %vm47_vm0, %v2750_v1  ;;  %s2692_s16 = smov 127   ;;  %s2693_s17 = smov 113   ;;  %v321_v19 = vld [vmem:[%s3177_s6] sm:$0xf]  ;;  %v2540_v60 = vld [vmem:[%s3173_s2 + $0x4] sm:$0xf] }
   0x7   :  { %2523 = vmatmul.mubr.msk.f32.vlgmr.msra.gmra.mrb[0].mxu0 %vm43_vm1, %v2761_v5  ;;  %2526 = vmatmul.mubr.msk.f32.vlgmr.msra.gmra.mrb[0].mxu1 %vm43_vm1, %v2761_v5  ;;  %s2694_s18 = smov 112   ;;  %s2695_s19 = smov 111   ;;  %v205_v22 = vadd.s32 256, %v2845_v21  ;;  %v2849_v23 = vadd.s32 128, %v2845_v21  ;;  %v2852_v25 = vadd.s32 384, %v2845_v21  ;;  %v211_v26 = vand.u32 255, %v2845_v21 }
   0x8   :  { %36 = vperm.xlu0 %2658, %v33_v7   ;;  %477 = vmatprep.mubr.f32.mxu1 %v2686_v4  ;;  %vm493_vm6 = vcmp.lt.s32.totalorder %v2845_v21, 17  ;;  %vm685_vm11 = vcmp.lt.s32.totalorder %v2845_v21, 16  ;;  %v484_v49 = vld [vmem:[%s3173_s2] sm:$0xf]  ;;  %vm873_vm12 = vcmp.lt.s32.totalorder %v2845_v21, 15 }
   0x9   :  { %406 = vmatprep.mubr.f32.mxu0 %v2686_v4  ;;  %v225_v24 = vand.u32 255, %v205_v22  ;;  %v218_v27 = vand.u32 255, %v2849_v23  ;;  %v232_v29 = vand.u32 255, %v2852_v25  ;;  %v2859_v30 = vand.u32 15, %v211_v26  ;;  %v2568_v3 = vld [vmem:[%s3173_s2 + $0x18] sm:$0xf] }
   0xa   :  { %vm2874_vm4 = vcmp.ge.s32.totalorder %v211_v26, 16 }
   0xb   :  { %v2856_v28 = vand.u32 15, %v225_v24  ;;  %v2863_v31 = vand.u32 15, %v218_v27  ;;  %vm2865_vm2 = vcmp.ge.s32.totalorder %v225_v24, 16  ;;  %v2872_v33 = vand.u32 15, %v232_v29 }
   0xc   :  { %vm311_vm5 = vcmp.ge.s32.totalorder %v2859_v30, 1  ;;  %vm315_vm15 = vcmp.lt.s32.totalorder %v2859_v30, 15 }
   0xd   :  { %vm313_vm3 = vcmp.ge.s32.totalorder %v2856_v28, 1  ;;  %vm312_vm8 = vcmp.ge.s32.totalorder %v2863_v31, 1  ;;  %vm314_vm9 = vcmp.ge.s32.totalorder %v2872_v33, 1  ;;  %vm2894_vm10 = vmand %vm2874_vm4, %vm311_vm5  ;;  %vm316_vm13 = vcmp.lt.s32.totalorder %v2863_v31, 15 }
   0xe   :  { %vm2884_vm7 = vmand %vm2865_vm2, %vm313_vm3  ;;  %vm317_vm14 = vcmp.lt.s32.totalorder %v2856_v28, 15 }
  0x87   :  { %v2778_v8 = vpop.permute.xlu0 %36 }
  0xda   :  { %v122_v9 = vpop.f32.mrb[0].mxu0  ;;  %v193_v10 = vpop.f32.mrb[0].mxu1 }
  0xdb   :  { %v2781_v11 = vadd.f32 %v122_v9, %v2778_v8  ;;  %v2784_v12 = vadd.f32 %v193_v10, %v2778_v8  ;;  %v124_v13 = vpop.f32.mrb[1].mxu0  ;;  %v195_v14 = vpop.f32.mrb[1].mxu1 }
  0xdc   :  { %v2787_v15 = vadd.f32 %v124_v13, %v2778_v8  ;;  %v2790_v16 = vadd.f32 %v195_v14, %v2778_v8 }
  0xdd   :  { %489 = vrot.lane.b32.xlu1 %v2784_v12, %s2688_s1  ;;  %485 = vrot.lane.b32.xlu0 %v2781_v11, %s2688_s1 }
  0xde   :  { %2528 = vmatprep.subr.msk.mxu0 %vm47_vm0, %v2787_v15  ;;  %2531 = vmatprep.subr.msk.mxu1 %vm47_vm0, %v2790_v16 }
  0xdf   :  { %2529 = vmatpush1.msk.msra.mxu0 %vm47_vm0, %v2781_v11  ;;  %2532 = vmatpush1.msk.msra.mxu1 %vm47_vm0, %v2784_v12 }
  0xe0   :  { %2530 = vmatmul.mubr.msk.f32.vlgmr.msra.gmra.mrb[2].mxu0 %vm43_vm1, %v2527_v17  ;;  %2533 = vmatmul.mubr.msk.f32.vlgmr.msra.gmra.mrb[2].mxu1 %vm43_vm1, %v2527_v17 }
  0xe1   :  { %487 = vrot.lane.b32.xlu1 %v2787_v15, %s2688_s1  ;;  %491 = vrot.lane.b32.xlu0 %v2790_v16, %s2688_s1 }
  0xe2   :  { %664 = vmatprep.mubr.f32.mxu1 %v2686_v4  ;;  %593 = vmatprep.mubr.f32.mxu0 %v2686_v4 }
  0xe5   :  { %677 = vrot.lane.b32.xlu1 %v2781_v11, %s2689_s13  ;;  %679 = vrot.lane.b32.xlu0 %v2787_v15, %s2689_s13 }
  0xe9   :  { %681 = vrot.lane.b32.xlu1 %v2784_v12, %s2689_s13  ;;  %683 = vrot.lane.b32.xlu0 %v2790_v16, %s2689_s13 }
  0xed   :  { %865 = vrot.lane.b32.xlu1 %v2781_v11, %s2690_s14  ;;  %867 = vrot.lane.b32.xlu0 %v2787_v15, %s2690_s14 }
  0xf1   :  { %869 = vrot.lane.b32.xlu1 %v2784_v12, %s2690_s14  ;;  %871 = vrot.lane.b32.xlu0 %v2790_v16, %s2690_s14 }
  0xf5   :  { %1057 = vrot.lane.b32.xlu1 %v2781_v11, %s2691_s15  ;;  %1059 = vrot.lane.b32.xlu0 %v2787_v15, %s2691_s15 }
  0xf9   :  { %1061 = vrot.lane.b32.xlu1 %v2784_v12, %s2691_s15  ;;  %1063 = vrot.lane.b32.xlu0 %v2790_v16, %s2691_s15 }
  0xfd   :  { %1245 = vrot.lane.b32.xlu1 %v2781_v11, %s2692_s16  ;;  %1247 = vrot.lane.b32.xlu0 %v2787_v15, %s2692_s16 }
 0x101   :  { %1249 = vrot.lane.b32.xlu1 %v2784_v12, %s2692_s16  ;;  %1251 = vrot.lane.b32.xlu0 %v2790_v16, %s2692_s16 }
 0x105   :  { %1433 = vrot.lane.b32.xlu1 %v2781_v11, %s2693_s17  ;;  %1435 = vrot.lane.b32.xlu0 %v2787_v15, %s2693_s17 }
 0x109   :  { %1437 = vrot.lane.b32.xlu1 %v2784_v12, %s2693_s17  ;;  %1439 = vrot.lane.b32.xlu0 %v2790_v16, %s2693_s17 }
 0x10d   :  { %1625 = vrot.lane.b32.xlu1 %v2781_v11, %s2694_s18  ;;  %1627 = vrot.lane.b32.xlu0 %v2787_v15, %s2694_s18 }
 0x111   :  { %1629 = vrot.lane.b32.xlu1 %v2784_v12, %s2694_s18  ;;  %1631 = vrot.lane.b32.xlu0 %v2790_v16, %s2694_s18 }
 0x115   :  { %1813 = vrot.lane.b32.xlu1 %v2781_v11, %s2695_s19  ;;  %1815 = vrot.lane.b32.xlu0 %v2787_v15, %s2695_s19 }
 0x119   :  { %1817 = vrot.lane.b32.xlu1 %v2784_v12, %s2695_s19  ;;  %1819 = vrot.lane.b32.xlu0 %v2790_v16, %s2695_s19 }
 0x11d   :  { %2326 = vperm.xlu0 %2658, %v2323_v18   ;;  %324 = vperm.xlu1 %2659, %v321_v19   ;;  %v2547_v19 = vld [vmem:[%s3173_s2 + $0x8] sm:$0xf] }
 0x14f   :  { %v490_v34 = vpop.permute.xlu1 %489  ;;  %v486_v35 = vpop.permute.xlu0 %485 }
 0x153   :  { %v488_v39 = vpop.permute.xlu1 %487  ;;  %v492_v40 = vpop.permute.xlu0 %491 }
 0x154   :  { %v495_v41 = vsel %vm493_vm6, %v488_v39, %v490_v34  ;;  %v496_v42 = vsel %vm493_vm6, %v486_v35, %v488_v39  ;;  %v494_v43 = vsel %vm493_vm6, %v490_v34, %v492_v40  ;;  %v497_v44 = vsel %vm493_vm6, %v492_v40, %v486_v35  ;;  %vm2951_vm6 = vmand %vm2865_vm2, %vm317_vm14 }
 0x155   :  { %v511_v45 = vsel %vm312_vm8, %v496_v42, 0.0  ;;  %v512_v46 = vsel %vm2884_vm7, %v495_v41, 0.0  ;;  %v510_v47 = vsel %vm2894_vm10, %v497_v44, 0.0  ;;  %v513_v48 = vsel %vm314_vm9, %v494_v43, 0.0  ;;  %vm878_vm10 = vmand %vm2874_vm4, %vm315_vm15  ;;  %v2554_v41 = vld [vmem:[%s3173_s2 + $0xc] sm:$0xf] }
 0x156   :  { %2534 = vmatprep.subr.msk.mxu0 %vm47_vm0, %v511_v45  ;;  %2537 = vmatprep.subr.msk.mxu1 %vm47_vm0, %v513_v48  ;;  %vm318_vm7 = vcmp.lt.s32.totalorder %v2872_v33, 15  ;;  %v2582_v33 = vld [vmem:[%s3173_s2 + $0x20] sm:$0xf] }
 0x157   :  { %v678_v50 = vpop.permute.xlu1 %677  ;;  %2538 = vmatpush1.msk.msra.mxu1 %vm47_vm0, %v512_v46  ;;  %v680_v51 = vpop.permute.xlu0 %679  ;;  %2535 = vmatpush1.msk.msra.mxu0 %vm47_vm0, %v510_v47 }
 0x158   :  { %v688_v52 = vsel %vm685_vm11, %v678_v50, %v680_v51  ;;  %2536 = vmatmul.mubr.msk.f32.vlgmr.msra.gmra.mrb[2].mxu0 %vm43_vm1, %v484_v49  ;;  %2539 = vmatmul.mubr.msk.f32.vlgmr.msra.gmra.mrb[2].mxu1 %vm43_vm1, %v484_v49 }
 0x159   :  { %2541 = vmatprep.subr.msk.mxu0 %vm47_vm0, %v688_v52  ;;  %852 = vmatprep.mubr.f32.mxu1 %v2686_v4 }
 0x15a   :  { %781 = vmatprep.mubr.f32.mxu0 %v2686_v4 }
 0x15b   :  { %v682_v53 = vpop.permute.xlu1 %681  ;;  %v684_v54 = vpop.permute.xlu0 %683 }
 0x15c   :  { %v687_v55 = vsel %vm685_vm11, %v680_v51, %v682_v53  ;;  %v686_v56 = vsel %vm685_vm11, %v682_v53, %v684_v54  ;;  %v689_v57 = vsel %vm685_vm11, %v684_v54, %v678_v50  ;;  %v2561_v53 = vld [vmem:[%s3173_s2 + $0x14] sm:$0xf]  ;;  %vm3027_vm11 = vcmp.lt.s32.totalorder %v218_v27, 240 }
 0x15d   :  { %v700_v58 = vsel %vm2865_vm2, %v687_v55, 0.0  ;;  %v698_v59 = vsel %vm2874_vm4, %v689_v57, 0.0  ;;  %2544 = vmatprep.subr.msk.mxu1 %vm47_vm0, %v686_v56  ;;  %vm1065_vm2 = vcmp.lt.s32.totalorder %v2845_v21, 1  ;;  %vm1253_vm4 = vcmp.lt.s32.totalorder %v2845_v21, 127 }
 0x15e   :  { %2542 = vmatpush1.msk.msra.mxu0 %vm47_vm0, %v698_v59  ;;  %2545 = vmatpush1.msk.msra.mxu1 %vm47_vm0, %v700_v58  ;;  %v199_v55 = vmax.f32 %v2787_v15, 0.0  ;;  %v200_v58 = vmax.f32 %v2784_v12, 0.0  ;;  %v2007_v15 = vld [vmem:[%s3174_s3] sm:$0xf]  ;;  %s2696_s3 = smov [#allocation2]  }
 0x15f   :  { %v866_v61 = vpop.permute.xlu1 %865  ;;  %v868_v62 = vpop.permute.xlu0 %867  ;;  %s2513_s15 = sshll.u32 %s2696_s3, 4  ;;  %s2514_s15 = int_to_ptr.vmem [resolvable:$true] %s2513_s15 }
 0x160   :  { %v876_v63 = vsel %vm873_vm12, %v866_v61, %v868_v62  ;;  %2543 = vmatmul.mubr.msk.f32.vlgmr.msra.gmra.mrb[2].mxu0 %vm43_vm1, %v2540_v60  ;;  %2546 = vmatmul.mubr.msk.f32.vlgmr.msra.gmra.mrb[2].mxu1 %vm43_vm1, %v2540_v60  ;;  %s2662_s16 = scalar_lea.vmem %s2514_s15, 256  ;;  %p2667_p1 = scmp.lt.s32.totalorder %s2514_s15, %s2514_s15 }
 0x161   :  { %v891_v2 = vsel %vm316_vm13, %v876_v63, 0.0  ;;  %1044 = vmatprep.mubr.f32.mxu1 %v2686_v4  ;;  %973 = vmatprep.mubr.f32.mxu0 %v2686_v4  ;;  %p2663_p0 = scmp.ne.s32.totalorder %s2514_s15, %s2662_s16  ;;  %p2668_p2 = scmp.lt.s32.totalorder %s2662_s16, %s2662_s16 }
 0x162   :  { %2548 = vmatprep.subr.msk.mxu0 %vm47_vm0, %v891_v2 }
 0x163   :  { %v870_v6 = vpop.permute.xlu1 %869  ;;  %v872_v7 = vpop.permute.xlu0 %871  ;;  %p2669_p3 = por %p2668_p2, %p2667_p1 }
 0x164   :  { %v875_v9 = vsel %vm873_vm12, %v868_v62, %v870_v6  ;;  %v874_v10 = vsel %vm873_vm12, %v870_v6, %v872_v7  ;;  %v877_v13 = vsel %vm873_vm12, %v872_v7, %v866_v61  ;;  %vm3035_vm12 = vcmp.lt.s32.totalorder %v232_v29, 240 }
 0x165   :  { %v892_v14 = vsel %vm2951_vm6, %v875_v9, 0.0  ;;  %v890_v17 = vsel %vm878_vm10, %v877_v13, 0.0  ;;  %v893_v18 = vsel %vm318_vm7, %v874_v10, 0.0  ;;  %vm1441_vm6 = vcmp.lt.s32.totalorder %v2845_v21, 113  ;;  %vm3046_vm10 = vmand %vm3027_vm11, %vm312_vm8  ;;  %p2670_p4 = pnand %p2669_p3, %p2663_p0 }
 0x166   :  { %2549 = vmatpush1.msk.msra.mxu0 %vm47_vm0, %v890_v17  ;;  %2551 = vmatprep.subr.msk.mxu1 %vm47_vm0, %v893_v18 }
 0x167   :  { %v1058_v20 = vpop.permute.xlu1 %1057  ;;  %2552 = vmatpush1.msk.msra.mxu1 %vm47_vm0, %v892_v14  ;;  %v1060_v22 = vpop.permute.xlu0 %1059 }
 0x168   :  { %v1068_v24 = vsel %vm1065_vm2, %v1058_v20, %v1060_v22  ;;  %2550 = vmatmul.mubr.msk.f32.vlgmr.msra.gmra.mrb[2].mxu0 %vm43_vm1, %v2547_v19  ;;  %2553 = vmatmul.mubr.msk.f32.vlgmr.msra.gmra.mrb[2].mxu1 %vm43_vm1, %v2547_v19 }
 0x169   :  { %v1079_v26 = vsel %vm312_vm8, %v1068_v24, 0.0  ;;  %1232 = vmatprep.mubr.f32.mxu1 %v2686_v4  ;;  %1161 = vmatprep.mubr.f32.mxu0 %v2686_v4  ;;  %vm3092_vm8 = vmand %vm3027_vm11, %vm316_vm13 }
 0x16a   :  { %2555 = vmatprep.subr.msk.mxu0 %vm47_vm0, %v1079_v26 }
 0x16b   :  { %v1062_v32 = vpop.permute.xlu1 %1061  ;;  %v1064_v34 = vpop.permute.xlu0 %1063 }
 0x16c   :  { %v1067_v35 = vsel %vm1065_vm2, %v1060_v22, %v1062_v32  ;;  %v1066_v36 = vsel %vm1065_vm2, %v1062_v32, %v1064_v34  ;;  %v1069_v37 = vsel %vm1065_vm2, %v1064_v34, %v1058_v20  ;;  %vm1449_vm2 = vmand %vm3035_vm12, %vm314_vm9  ;;  %v2575_v20 = vld [vmem:[%s3173_s2 + $0x1c] sm:$0xf] }
 0x16d   :  { %v1080_v38 = vsel %vm313_vm3, %v1067_v35, 0.0  ;;  %v1078_v39 = vsel %vm311_vm5, %v1069_v37, 0.0  ;;  %v1081_v40 = vsel %vm314_vm9, %v1066_v36, 0.0  ;;  %vm1829_vm9 = vmand %vm3035_vm12, %vm318_vm7 }
 0x16e   :  { %2556 = vmatpush1.msk.msra.mxu0 %vm47_vm0, %v1078_v39  ;;  %2558 = vmatprep.subr.msk.mxu1 %vm47_vm0, %v1081_v40 }
 0x16f   :  { %v1246_v42 = vpop.permute.xlu1 %1245  ;;  %2559 = vmatpush1.msk.msra.mxu1 %vm47_vm0, %v1080_v38  ;;  %v1248_v43 = vpop.permute.xlu0 %1247 }
 0x170   :  { %2557 = vmatmul.mubr.msk.f32.vlgmr.msra.gmra.mrb[2].mxu0 %vm43_vm1, %v2554_v41  ;;  %2560 = vmatmul.mubr.msk.f32.vlgmr.msra.gmra.mrb[2].mxu1 %vm43_vm1, %v2554_v41  ;;  %v1256_v44 = vsel %vm1253_vm4, %v1246_v42, %v1248_v43 }
 0x171   :  { %1420 = vmatprep.mubr.f32.mxu1 %v2686_v4  ;;  %1349 = vmatprep.mubr.f32.mxu0 %v2686_v4  ;;  %v1266_v54 = vsel %vm315_vm15, %v1256_v44, 0.0 }
 0x173   :  { %v1250_v45 = vpop.permute.xlu1 %1249  ;;  %v1252_v46 = vpop.permute.xlu0 %1251 }
 0x174   :  { %v1255_v47 = vsel %vm1253_vm4, %v1248_v43, %v1250_v45  ;;  %v1254_v48 = vsel %vm1253_vm4, %v1250_v45, %v1252_v46  ;;  %v1257_v49 = vsel %vm1253_vm4, %v1252_v46, %v1246_v42 }
 0x175   :  { %v1267_v50 = vsel %vm316_vm13, %v1255_v47, 0.0  ;;  %v1268_v51 = vsel %vm317_vm14, %v1254_v48, 0.0  ;;  %v1269_v52 = vsel %vm318_vm7, %v1257_v49, 0.0 }
 0x176   :  { %2562 = vmatprep.subr.msk.mxu0 %vm47_vm0, %v1267_v50  ;;  %2565 = vmatprep.subr.msk.mxu1 %vm47_vm0, %v1269_v52 }
 0x177   :  { %v1434_v56 = vpop.permute.xlu1 %1433  ;;  %2566 = vmatpush1.msk.msra.mxu1 %vm47_vm0, %v1268_v51  ;;  %v1436_v57 = vpop.permute.xlu0 %1435  ;;  %2563 = vmatpush1.msk.msra.mxu0 %vm47_vm0, %v1266_v54  ;;  %v2008_v54 = vld [vmem:[%s3175_s4] sm:$0xf] }
 0x178   :  { %2564 = vmatmul.mubr.msk.f32.vlgmr.msra.gmra.mrb[2].mxu0 %vm43_vm1, %v2561_v53  ;;  %2567 = vmatmul.mubr.msk.f32.vlgmr.msra.gmra.mrb[2].mxu1 %vm43_vm1, %v2561_v53  ;;  %v1444_v25 = vsel %vm1441_vm6, %v1434_v56, %v1436_v57 }
 0x179   :  { %1612 = vmatprep.mubr.f32.mxu1 %v2686_v4  ;;  %1541 = vmatprep.mubr.f32.mxu0 %v2686_v4  ;;  %v1458_v6 = vsel %vm311_vm5, %v1444_v25, 0.0  ;;  %vm1821_vm5 = vcmp.lt.s32.totalorder %v2845_v21, 111 }
 0x17b   :  { %v1438_v27 = vpop.permute.xlu1 %1437  ;;  %v1440_v29 = vpop.permute.xlu0 %1439 }
 0x17c   :  { %v1443_v59 = vsel %vm1441_vm6, %v1436_v57, %v1438_v27  ;;  %v1442_v60 = vsel %vm1441_vm6, %v1438_v27, %v1440_v29  ;;  %v1445_v61 = vsel %vm1441_vm6, %v1440_v29, %v1434_v56  ;;  %v201_v56 = vmax.f32 %v2790_v16, 0.0 }
 0x17d   :  { %v1459_v62 = vsel %vm3046_vm10, %v1443_v59, 0.0  ;;  %v1460_v63 = vsel %vm313_vm3, %v1442_v60, 0.0  ;;  %v1461_v2 = vsel %vm1449_vm2, %v1445_v61, 0.0  ;;  %vm1633_vm3 = vcmp.lt.s32.totalorder %v2845_v21, 112 }
 0x17e   :  { %2569 = vmatprep.subr.msk.mxu0 %vm47_vm0, %v1459_v62  ;;  %2572 = vmatprep.subr.msk.mxu1 %vm47_vm0, %v1461_v2  ;;  %v198_v57 = vmax.f32 %v2781_v11, 0.0 }
 0x17f   :  { %v1626_v7 = vpop.permute.xlu1 %1625  ;;  %2573 = vmatpush1.msk.msra.mxu1 %vm47_vm0, %v1460_v63  ;;  %v1628_v9 = vpop.permute.xlu0 %1627  ;;  %2570 = vmatpush1.msk.msra.mxu0 %vm47_vm0, %v1458_v6 }
 0x180   :  { %2571 = vmatmul.mubr.msk.f32.vlgmr.msra.gmra.mrb[2].mxu0 %vm43_vm1, %v2568_v3  ;;  %2574 = vmatmul.mubr.msk.f32.vlgmr.msra.gmra.mrb[2].mxu1 %vm43_vm1, %v2568_v3  ;;  %v1636_v22 = vsel %vm1633_vm3, %v1626_v7, %v1628_v9 }
 0x181   :  { %1800 = vmatprep.mubr.f32.mxu1 %v2686_v4  ;;  %1729 = vmatprep.mubr.f32.mxu0 %v2686_v4 }
 0x183   :  { %v1630_v10 = vpop.permute.xlu1 %1629  ;;  %v1632_v13 = vpop.permute.xlu0 %1631 }
 0x184   :  { %v1635_v14 = vsel %vm1633_vm3, %v1628_v9, %v1630_v10  ;;  %v1637_v17 = vsel %vm1633_vm3, %v1632_v13, %v1626_v7  ;;  %v1634_v24 = vsel %vm1633_vm3, %v1630_v10, %v1632_v13 }
 0x185   :  { %v1647_v18 = vsel %vm3027_vm11, %v1635_v14, 0.0  ;;  %v1649_v19 = vsel %vm3035_vm12, %v1637_v17, 0.0 }
 0x186   :  { %2576 = vmatprep.subr.msk.mxu0 %vm47_vm0, %v1647_v18  ;;  %2579 = vmatprep.subr.msk.mxu1 %vm47_vm0, %v1649_v19 }
 0x187   :  { %v1814_v26 = vpop.permute.xlu1 %1813  ;;  %2580 = vmatpush1.msk.msra.mxu1 %vm47_vm0, %v1634_v24  ;;  %v1816_v32 = vpop.permute.xlu0 %1815  ;;  %2577 = vmatpush1.msk.msra.mxu0 %vm47_vm0, %v1636_v22 }
 0x188   :  { %2578 = vmatmul.mubr.msk.f32.vlgmr.msra.gmra.mrb[2].mxu0 %vm43_vm1, %v2575_v20  ;;  %2581 = vmatmul.mubr.msk.f32.vlgmr.msra.gmra.mrb[2].mxu1 %vm43_vm1, %v2575_v20  ;;  %v1824_v21 = vsel %vm1821_vm5, %v1814_v26, %v1816_v32 }
 0x189   :  { %1921 = vmatprep.mubr.f32.mxu0 %v2686_v4  ;;  %1992 = vmatprep.mubr.f32.mxu1 %v2686_v4  ;;  %v1838_v42 = vsel %vm315_vm15, %v1824_v21, 0.0 }
 0x18b   :  { %v1818_v35 = vpop.permute.xlu1 %1817  ;;  %v1820_v36 = vpop.permute.xlu0 %1819 }
 0x18c   :  { %v1823_v37 = vsel %vm1821_vm5, %v1816_v32, %v1818_v35  ;;  %v1822_v31 = vsel %vm1821_vm5, %v1818_v35, %v1820_v36  ;;  %v1825_v38 = vsel %vm1821_vm5, %v1820_v36, %v1814_v26 }
 0x18d   :  { %v1839_v39 = vsel %vm3092_vm8, %v1823_v37, 0.0  ;;  %v1840_v40 = vsel %vm317_vm14, %v1822_v31, 0.0  ;;  %v1841_v41 = vsel %vm1829_vm9, %v1825_v38, 0.0 }
 0x18e   :  { %2583 = vmatprep.subr.msk.mxu0 %vm47_vm0, %v1839_v39  ;;  %2586 = vmatprep.subr.msk.mxu1 %vm47_vm0, %v1841_v41 }
 0x18f   :  { %2584 = vmatpush1.msk.msra.mxu0 %vm47_vm0, %v1838_v42  ;;  %2587 = vmatpush1.msk.msra.mxu1 %vm47_vm0, %v1840_v40 }
 0x190   :  { %2585 = vmatmul.mubr.msk.f32.vlgmr.msra.gmra.mrb[2].mxu0 %vm43_vm1, %v2582_v33  ;;  %2588 = vmatmul.mubr.msk.f32.vlgmr.msra.gmra.mrb[2].mxu1 %vm43_vm1, %v2582_v33 }
 0x191   :  { %2088 = vmatprep.mubr.f32.mxu0 %v2686_v4  ;;  %2159 = vmatprep.mubr.f32.mxu1 %v2686_v4 }
 0x19c   :  { %v325_v28 = vpop.permute.xlu1 %324  ;;  %v2327_v11 = vpop.permute.xlu0 %2326 }
 0x263   :  { %v1923_v43 = vpop.f32.mrb[2].mxu0  ;;  %v1994_v30 = vpop.f32.mrb[2].mxu1 }
 0x264   :  { %v2607_v44 = vadd.f32 %v1923_v43, %v325_v28  ;;  %v2609_v45 = vadd.f32 %v1994_v30, %v325_v28  ;;  %v1925_v46 = vpop.f32.mrb[3].mxu0  ;;  %v1996_v47 = vpop.f32.mrb[3].mxu1 }
 0x265   :  { %v2608_v48 = vadd.f32 %v1925_v46, %v325_v28  ;;  %v2610_v49 = vadd.f32 %v1996_v47, %v325_v28 }
 0x266   :  { %v2003_v52 = vmax.f32 %v2607_v44, 0.0  ;;  %v2005_v53 = vmax.f32 %v2609_v45, 0.0 }
 0x267   :  { %v2004_v50 = vmax.f32 %v2608_v48, 0.0  ;;  %v2006_v51 = vmax.f32 %v2610_v49, 0.0 }
 0x269   :  { %2589 = vmatprep.subr.msk.mxu0 %vm47_vm0, %v2004_v50  ;;  %2592 = vmatprep.subr.msk.mxu1 %vm47_vm0, %v2006_v51 }
 0x26a   :  { %2590 = vmatpush1.msk.msra.mxu0 %vm47_vm0, %v2003_v52  ;;  %2593 = vmatpush1.msk.msra.mxu1 %vm47_vm0, %v2005_v53 }
 0x26b   :  { %2591 = vmatmul.mubr.msk.f32.vlgmr.msra.gmra.mrb[4].mxu0 %vm43_vm1, %v2008_v54  ;;  %2594 = vmatmul.mubr.msk.f32.vlgmr.msra.gmra.mrb[4].mxu1 %vm43_vm1, %v2008_v54 }
 0x26c   :  { %2595 = vmatprep.subr.msk.mxu0 %vm47_vm0, %v199_v55  ;;  %2598 = vmatprep.subr.msk.mxu1 %vm47_vm0, %v201_v56 }
 0x26d   :  { %2596 = vmatpush1.msk.msra.mxu0 %vm47_vm0, %v198_v57  ;;  %2599 = vmatpush1.msk.msra.mxu1 %vm47_vm0, %v200_v58 }
 0x26e   :  { %2245 = vmatprep.mubr.f32.mxu0 %v2686_v4  ;;  %2316 = vmatprep.mubr.f32.mxu1 %v2686_v4 }
 0x273   :  { %2597 = vmatmul.mubr.msk.f32.vlgmr.msra.gmra.mrb[4].mxu0 %vm43_vm1, %v2007_v15  ;;  %2600 = vmatmul.mubr.msk.f32.vlgmr.msra.gmra.mrb[4].mxu1 %vm43_vm1, %v2007_v15 }
 0x274   :  { %2413 = vmatprep.mubr.f32.mxu0 %v2686_v4  ;;  %2484 = vmatprep.mubr.f32.mxu1 %v2686_v4 }
 0x346   :  { %v2247_v12 = vpop.f32.mrb[4].mxu0  ;;  %v2318_v16 = vpop.f32.mrb[4].mxu1 }
 0x347   :  { %v2329_v23 = vadd.f32 %v2327_v11, %v2247_v12  ;;  %v2331_v25 = vadd.f32 %v2327_v11, %v2318_v16  ;;  %v2249_v27 = vpop.f32.mrb[5].mxu0  ;;  %v2320_v29 = vpop.f32.mrb[5].mxu1 }
 0x348   :  { %v2330_v59 = vadd.f32 %v2327_v11, %v2249_v27  ;;  %v2332_v60 = vadd.f32 %v2327_v11, %v2320_v29 }
 0x349   :  { %v2333_v63 = vmax.f32 %v2329_v23, 0.0  ;;  %v2335_v2 = vmax.f32 %v2331_v25, 0.0 }
 0x34a   :  { %v2334_v61 = vmax.f32 %v2330_v59, 0.0  ;;  %v2336_v62 = vmax.f32 %v2332_v60, 0.0 }
 0x34c   :  { %2601 = vmatprep.subr.msk.mxu0 %vm47_vm0, %v2334_v61  ;;  %2604 = vmatprep.subr.msk.mxu1 %vm47_vm0, %v2336_v62 }
 0x34d   :  { %2602 = vmatpush1.msk.msra.mxu0 %vm47_vm0, %v2333_v63  ;;  %2605 = vmatpush1.msk.msra.mxu1 %vm47_vm0, %v2335_v2 }
 0x34e   :  { %2603 = vmatmul.mubr.msk.f32.vlgmr.msra.gmra.mrb[6].mxu0 %vm43_vm1, %v2761_v5  ;;  %2606 = vmatmul.mubr.msk.f32.vlgmr.msra.gmra.mrb[6].mxu1 %vm43_vm1, %v2761_v5 }
 0x421   :  { %v2415_v4 = vpop.f32.mrb[6].mxu0  ;;  %v2486_v3 = vpop.f32.mrb[6].mxu1 }
 0x422   :  { %v2416_v6 = vadd.f32 %v2415_v4, %v2778_v8  ;;  %v2487_v7 = vadd.f32 %v2486_v3, %v2778_v8  ;;  %v2417_v9 = vpop.f32.mrb[7].mxu0  ;;  %v2488_v10 = vpop.f32.mrb[7].mxu1 }
 0x423   :  { %v2418_v13 = vadd.f32 %v2417_v9, %v2778_v8  ;;  %v2489_v14 = vadd.f32 %v2488_v10, %v2778_v8 }
 0x424   :  { %v2491_v17 = vmax.f32 %v2416_v6, 0.0  ;;  %v2493_v18 = vmax.f32 %v2487_v7, 0.0 }
 0x425   :  { %v2492_v19 = vmax.f32 %v2418_v13, 0.0  ;;  %v2494_v20 = vmax.f32 %v2489_v14, 0.0 }
 0x427   :  { %v2499_v22 = vcombine.low %v2491_v17, %v2492_v19  ;;  %v2500_v5 = vcombine.low %v2493_v18, %v2494_v20 }
 0x429   :  { %v2503_v24 = vadd.f32 %v2499_v22, %v2745_v0  ;;  %v2504_v26 = vadd.f32 %v2500_v5, %v2750_v1 }
 0x42b   :  { %2505 = vst [vmem:[#allocation2] sm:$0xff] %v2503_v24  ;;  %2506 = vst [vmem:[#allocation2 + $0x8] sm:$0xff] %v2504_v26 }
 0x42c   :  { %2673 = shalt.err (!%p2670_p4)
}
 0x42d   :  { %s2674_s19 = scalar_lea.hbm %s3179_s8, 256 }
 0x42e   :  { %p2675_p5 = scmp.ne.s32.totalorder %s3179_s8, %s2674_s19  ;;  %p2678_p6 = scmp.lt.u32.totalorder %s2674_s19, %s3179_s8 }
 0x430   :  { %p2680_p7 = pnand %p2678_p6, %p2675_p5 }
 0x432   :  { %2683 = shalt.err (!%p2680_p7)
}
 0x433   :  { %2516 = dma.vmem_to_hbm [thread:$0]  %s2514_s15, 256, %s3179_s8, [#allocation3]  }
 0x434   :  { %2684 = dma.done.wait [#allocation3], 256  }
 0x435   :  { %2685 = vsyncadd [#allocation3], 4294967040 }
 0x436   :  { %2520 = vsyncpa [#allocation3], 1 }

</bundles_post_ra>
